<compile_context>
chip_gen: v5e
topology: v5e:2x2
jax: 0.10.0
libtpu: 0.0.40
codegen_flags: <defaults>
</compile_context>

<pallas_src>
import functools
import math

import jax
import jax.numpy as jnp
from jax import lax
from jax.experimental import pallas as pl
from jax.experimental.pallas import tpu as pltpu


def _round_up(x, m):
    return (x + m - 1) // m * m


_ONEHOT_MAX_VOCAB = 2048          # one-hot MXU gather only for small vocabs
_VMEM_HEADROOM = 16 * 1024 * 1024  # Mosaic internal scratch / double buffers


def _vmem_capacity_bytes():
    """Per-core VMEM capacity; conservative 64 MiB (v7x) if the query fails
    (e.g. CPU / interpret mode)."""
    try:
        return int(pltpu.get_tpu_info().vmem_capacity_bytes)
    except Exception:
        return 64 * 1024 * 1024


def _dropout_keep_mask(shape, chunk_id, chunk, d, seed, dropout_p):
    """Stateless keep mask from an integer hash of the global element index.

    Uses only VPU int32 ops (iota, xor, mul, shift, compare) so it lowers on
    every TPU generation and in interpret mode.  Keep-probability is 1 - p via
    a single integer threshold compare (no float uniform construction).
    """
    r = lax.broadcasted_iota(jnp.int32, shape, 0)
    c = lax.broadcasted_iota(jnp.int32, shape, 1)
    gidx = (chunk_id * jnp.int32(chunk) + r) * jnp.int32(d) + c
    x = gidx + seed * jnp.int32(374761393)          # mix seed (wraps, fine)
    x = (x ^ (x >> 15)) * jnp.int32(0x2C1B3C6D)     # xxhash-style avalanche
    x = (x ^ (x >> 12)) * jnp.int32(0x297A2D39)
    x = x ^ (x >> 15)
    bits31 = x & jnp.int32(0x7FFFFFFF)              # ~uniform over [0, 2^31)
    thr = jnp.int32(min(int(round(dropout_p * float(1 << 31))), (1 << 31) - 1))
    return bits31 >= thr


def _embed_gather_kernel(seed_ref, ids_ref, tab_ref, o_ref, *,
                         vocab_size, use_onehot, dropout_p, train):
    """One grid step gathers a (chunk, D) block of embeddings and (train mode)
    applies fused inverted dropout before the single dense block store.

    seed_ref : (1,) int32 scalar-prefetch ref in SMEM
    ids_ref  : (chunk, 1) int32 VMEM block (one-hot path) or (chunk,) (take path)
    tab_ref  : (V, D) table, whole array resident in VMEM
    o_ref    : (chunk, D) output block
    """
    chunk, d = o_ref.shape

    if use_onehot:
        # One-hot MXU matmul gather: MXU is otherwise idle, result is lane- and
        # sublane-dense, so the store is an unmasked vst and dropout fuses on a
        # dense tile.  Exact for a one-hot LHS (selects a single table row).
        col = lax.broadcasted_iota(jnp.int32, (chunk, vocab_size), 1)
        onehot = (col == ids_ref[...]).astype(tab_ref.dtype)
        gathered = jnp.dot(onehot, tab_ref[...],
                           preferred_element_type=jnp.float32)
    else:
        # Vectorized gather over the whole chunk from the VMEM-resident table
        # (Mosaic dynamic-gather lowering); no per-row masked copies.
        gathered = jnp.take(tab_ref[...], ids_ref[...], axis=0)
        gathered = gathered.astype(jnp.float32)

    if train and dropout_p > 0.0:
        keep = _dropout_keep_mask((chunk, d), pl.program_id(0), chunk, d,
                                  seed_ref[0], float(dropout_p))
        scale = jnp.float32(1.0 / (1.0 - dropout_p))
        gathered = jnp.where(keep, gathered * scale, jnp.float32(0.0))

    o_ref[...] = gathered.astype(o_ref.dtype)


def embedding_lookup(table, ids, *, dropout_p=0.0, train=False, seed=0):
    """Gather rows of `table` (V, D) at `ids` (B, L) -> (B, L, D).

    Train mode fuses inverted dropout (keep-prob 1-p, scale 1/(1-p)) into the
    same kernel pass; eval mode is a pure lookup.
    Note: out-of-range ids are clamped to [0, V-1] (PyTorch nn.Embedding would
    raise) — documented divergence.
    """
    V, D = table.shape
    B, L = ids.shape
    N = B * L
    itemsize = jnp.dtype(table.dtype).itemsize

    flat_ids = jnp.clip(ids.reshape(N).astype(jnp.int32), 0, V - 1)

    use_onehot = V <= _ONEHOT_MAX_VOCAB

    # ---- chunk selection: ~2 MiB output blocks, adaptive to D ----
    row_bytes = _round_up(D, 128) * itemsize
    # one-hot path only needs sublane alignment (8); the jnp.take path passes
    # ids as a 1-D (chunk,) block, which needs lane alignment (128).
    align = 8 if use_onehot else 128
    chunk = max(align, ((2 << 20) // row_bytes) // align * align)
    if use_onehot:
        # keep the (chunk, V) one-hot intermediate modest
        onehot_row_bytes = _round_up(V, 128) * itemsize
        chunk = min(chunk,
                    max(align, ((4 << 20) // onehot_row_bytes) // align * align))
    chunk = min(chunk, _round_up(N, align))
    n_pad = _round_up(N, chunk)
    n_chunks = n_pad // chunk

    # ---- generation-aware VMEM budgeting ----
    table_vmem = _round_up(V, 8) * _round_up(D, 128) * itemsize
    out_block_vmem = chunk * _round_up(D, 128) * itemsize
    ids_block_vmem = _round_up(chunk, 8) * 128 * 4
    onehot_vmem = chunk * _round_up(V, 128) * itemsize if use_onehot else 0
    needed = (table_vmem + 2 * (out_block_vmem + ids_block_vmem)
              + onehot_vmem + _VMEM_HEADROOM)
    capacity = _vmem_capacity_bytes()

    if needed > capacity:
        # Table + working blocks don't fit this generation's VMEM: fall back to
        # XLA's native gather (near HBM roofline for a plain lookup).
        # TODO(synk): Pallas scalar-prefetch + pl.Element row-gather with
        # Buffered(3) to keep dropout fused for huge vocabularies.
        out = jnp.take(table, flat_ids, axis=0)
        if train and dropout_p > 0.0:
            keep = jax.random.bernoulli(jax.random.PRNGKey(seed),
                                        1.0 - dropout_p, out.shape)
            out = jnp.where(keep, out / (1.0 - dropout_p), 0.0).astype(out.dtype)
        return out.reshape(B, L, D)

    flat_ids = jnp.pad(flat_ids, (0, n_pad - N))     # pad with valid id 0
    seed_arr = jnp.asarray([seed], dtype=jnp.int32)

    if use_onehot:
        ids_arr = flat_ids.reshape(n_pad, 1)          # sublane layout for one-hot
        ids_spec = pl.BlockSpec((chunk, 1), lambda i, _seed: (i, 0))
    else:
        ids_arr = flat_ids                            # 1-D lane layout for take
        ids_spec = pl.BlockSpec((chunk,), lambda i, _seed: (i,))

    kernel = functools.partial(_embed_gather_kernel, vocab_size=V,
                               use_onehot=use_onehot,
                               dropout_p=float(dropout_p), train=bool(train))

    out_flat = pl.pallas_call(
        kernel,
        out_shape=jax.ShapeDtypeStruct((n_pad, D), table.dtype),
        grid_spec=pltpu.PrefetchScalarGridSpec(
            num_scalar_prefetch=1,              # dropout seed -> SMEM
            grid=(n_chunks,),
            in_specs=[
                ids_spec,
                # Whole table resident in VMEM: one HBM->VMEM copy total.
                # TODO(synk): use pltpu.MemorySpace.VMEM_SHARED on v7x so the
                # two TensorCores share a single table copy.
                pl.BlockSpec(memory_space=pltpu.MemorySpace.VMEM),
            ],
            out_specs=pl.BlockSpec((chunk, D), lambda i, _seed: (i, 0)),
        ),
        compiler_params=pltpu.CompilerParams(
            dimension_semantics=("parallel",),   # chunks are independent
            vmem_limit_bytes=int(min(capacity, max(needed, 32 << 20)))),
    )(seed_arr, ids_arr, table)

    return out_flat[:N].reshape(B, L, D)


def make_embedding_table(key, vocab_size, embedding_dim, padding_index=None):
    """kaiming_uniform_(a=0, mode='fan_in', nonlinearity='linear') on (V, D):
    gain = 1, fan_in = D, bound = sqrt(3 / D)  ->  U(-bound, bound)."""
    bound = math.sqrt(3.0 / embedding_dim)
    table = jax.random.uniform(
        key, (vocab_size, embedding_dim), dtype=jnp.float32,
        minval=-bound, maxval=bound)
    if padding_index is not None:
        table = table.at[padding_index].set(0.0)
    return table


def embedding_layer_forward(table, vocab_id_list, dropout_p=0.1, train=False,
                            seed=0):
    """Mirrors EmbeddingLayer.forward: embedding(ids) -> dropout.
    Eval mode: dropout is identity. Train mode: inverted dropout fused in-kernel.
    # TODO(synk): PyTorch's exact dropout RNG stream is not reproducible; the
    # fused hash-based dropout matches keep-probability and 1/(1-p) scaling only.
    """
    return embedding_lookup(table, vocab_id_list, dropout_p=dropout_p,
                            train=train, seed=seed)


if __name__ == "__main__":
    key = jax.random.PRNGKey(0)
    k_tab, k_ids = jax.random.split(key)

    vocab_size = 50
    embedding_dim = 32
    batch = 2
    seq = 8
    padding_index = 0

    table = make_embedding_table(k_tab, vocab_size, embedding_dim, padding_index)
    vocab_id_list = jax.random.randint(
        k_ids, (batch, seq), minval=0, maxval=vocab_size, dtype=jnp.int32)

    ref = jnp.take(table, vocab_id_list, axis=0)

    # Eval mode: pure gather, must match the reference lookup.
    out_eval = embedding_layer_forward(table, vocab_id_list,
                                       dropout_p=0.1, train=False)
    out_eval = jax.block_until_ready(out_eval)
    assert out_eval.shape == (batch, seq, embedding_dim)
    assert jnp.allclose(out_eval, ref, atol=1e-6), \
        "Pallas embedding lookup mismatch (eval)"

    # Train mode: fused in-kernel dropout; every element must be either 0
    # (dropped) or ref / (1 - p) (kept, inverted-dropout scaled).
    p = 0.25
    out_train = embedding_layer_forward(table, vocab_id_list,
                                        dropout_p=p, train=True, seed=123)
    out_train = jax.block_until_ready(out_train)
    scaled = ref / (1.0 - p)
    ok = (jnp.isclose(out_train, 0.0, atol=1e-6) |
          jnp.isclose(out_train, scaled, rtol=1e-5, atol=1e-6))
    assert out_train.shape == (batch, seq, embedding_dim)
    assert bool(jnp.all(ok)), "Fused dropout output structure mismatch (train)"

    print("KERNEL_OK")
</pallas_src>

<mosaic_0001>
module attributes {stable_mosaic.version = 11 : i64} {
  func.func @_embed_gather_kernel(%arg0: i32, %arg1: memref<1xi32, #tpu.memory_space<smem>>, %arg2: memref<16x1xi32, #tpu.memory_space<vmem>>, %arg3: memref<50x32xf32, #tpu.memory_space<vmem>>, %arg4: memref<16x32xf32, #tpu.memory_space<vmem>>) attributes {dimension_semantics = [#tpu.dimension_semantics<parallel>], iteration_bounds = array<i64: 1>, scalar_prefetch = 1 : i64, scratch_operands = 0 : i64, tpu.core_type = #tpu.core_type<tc>, window_params = [{transform_indices = @transform_0, window_bounds = array<i64: 16, 1>}, {pipeline_mode = #tpu.pipeline_mode<synchronous>, transform_indices = @transform_1, window_bounds = array<i64: 50, 32>}, {transform_indices = @transform_2, window_bounds = array<i64: 16, 32>}]} {
    %0 = tpu.iota {dimensions = array<i32: 1>} : vector<16x50xi32>
    %c0 = arith.constant 0 : index
    %c0_0 = arith.constant 0 : index
    %1 = vector.load %arg2[%c0, %c0_0] : memref<16x1xi32, #tpu.memory_space<vmem>>, vector<16x1xi32>
    %2 = vector.broadcast %1 : vector<16x1xi32> to vector<16x50xi32>
    %3 = arith.cmpi eq, %0, %2 : vector<16x50xi32>
    %4 = arith.extui %3 : vector<16x50xi1> to vector<16x50xi32>
    %5 = arith.sitofp %4 : vector<16x50xi32> to vector<16x50xf32>
    %c0_1 = arith.constant 0 : index
    %c0_2 = arith.constant 0 : index
    %6 = vector.load %arg3[%c0_1, %c0_2] : memref<50x32xf32, #tpu.memory_space<vmem>>, vector<50x32xf32>
    %cst = arith.constant dense<0.000000e+00> : vector<16x32xf32>
    %7 = tpu.matmul %5, %6, %cst {dimension_numbers = #tpu.dot_dimension_numbers<[1], [0], [0], [1], [0, 0, 1, 1], [], []>} : vector<16x50xf32>, vector<50x32xf32>, vector<16x32xf32> -> vector<16x32xf32>
    %c0_3 = arith.constant 0 : index
    %c0_4 = arith.constant 0 : index
    %8 = vector.load %arg4[%c0_3, %c0_4] : memref<16x32xf32, #tpu.memory_space<vmem>>, vector<16x32xf32>
    tpu.vector_store %arg4[%c0_3, %c0_4], %7 {strides = array<i32>} : memref<16x32xf32, #tpu.memory_space<vmem>>, vector<16x32xf32>,
    return
  }
  func.func @transform_0(%arg0: i32, %arg1: memref<1xi32, #tpu.memory_space<smem>>) -> (i32, i32) {
    %c0_i32 = arith.constant 0 : i32
    %c0_i32_0 = arith.constant 0 : i32
    return %arg0, %c0_i32 : i32, i32
  }
  func.func @transform_1(%arg0: i32, %arg1: memref<1xi32, #tpu.memory_space<smem>>) -> (i32, i32) {
    %c0_i32 = arith.constant 0 : i32
    %c0_i32_0 = arith.constant 0 : i32
    %c0_i32_1 = arith.constant 0 : i32
    return %c0_i32, %c0_i32_0 : i32, i32
  }
  func.func @transform_2(%arg0: i32, %arg1: memref<1xi32, #tpu.memory_space<smem>>) -> (i32, i32) {
    %c0_i32 = arith.constant 0 : i32
    %c0_i32_0 = arith.constant 0 : i32
    return %arg0, %c0_i32 : i32, i32
  }
}

</mosaic_0001>

<bundles_post_ra>
// kernel: tpu_custom_call.1
= control target key start
LH: loop header
LB: loop body
LE: loop exit
PB: predicated region body
PF: predicated region fallthrough
CT: control target
= control target key end

     0   :  { %vm44_vm0 = vcmask 1041408   ;;  %v136_v2 = vmov 0   ;;  %s191_s0 = inlined_call_operand.<no memory space> [shape: s32[1], index: 0, kind: input, shape index: {}]   ;;  %s192_s1 = inlined_call_operand.vmem [shape: s32[16,1], index: 1, kind: input, shape index: {}]   ;;  %s193_s2 = inlined_call_operand.vmem [shape: f32[50,32], index: 2, kind: input, shape index: {}]   ;;  %s194_s3 = inlined_call_operand.hbm [shape: f32[16,32], index: 3, kind: output, shape index: {}]  }
   0x1   :  { %v16_v0 = vld [vmem:[%s192_s1] sm:$0xff]  ;;  %v36_v1 = vld [vmem:[%s193_s2 + $0x30] sm:$0x3]  ;;  %109 = vset.pattern.permute.xlu0 %v136_v2  ;;  %v35_v3 = vld [vmem:[%s193_s2 + $0x28] sm:$0xff] }
   0x2   :  { %94 = vmatpush.msk.msra.mxu0 %vm44_vm0, %v36_v1  ;;  %19 = vperm.xlu0 %109, %v16_v0   ;;  %v34_v4 = vld [vmem:[%s193_s2 + $0x20] sm:$0xff] }
   0x3   :  { %97 = vmatpush.msk.msra.mxu1 %vm44_vm0, %v36_v1 }
   0x4   :  { %9 = vsyncpa [#allocation5], 0  ;;  %58 = vmatpush.msra.mxu0 %v35_v3  ;;  %v33_v5 = vld [vmem:[%s193_s2 + $0x18] sm:$0xff]  ;;  %v32_v6 = vld [vmem:[%s193_s2 + $0x10] sm:$0xff]  ;;  %v14_v10 = vlaneseq  ;;  %vm37_vm1 = vcmask 408576   ;;  %v137_v13 = vmov 0.0  }
   0x5   :  { %98 = vmatpush.msra.mxu1 %v35_v3  ;;  %v17_v7 = vld [vmem:[%s192_s1 + $0x8] sm:$0xff]  ;;  %v30_v9 = vld [vmem:[%s193_s2] sm:$0xff]  ;;  %vm71_vm4 = vcmask 261120   ;;  %s138_s1 = smov [#allocation4]   ;;  %s80_s4 = sshll.u32 %s194_s3, 4  ;;  %s81_s4 = int_to_ptr.hbm [resolvable:$true] %s80_s4 }
   0x6   :  { %59 = vmatpush.msra.mxu0 %v34_v4  ;;  %v31_v8 = vld [vmem:[%s193_s2 + $0x8] sm:$0xff]  ;;  %v15_v11 = vand.u32 127, %v14_v10  ;;  %s78_s29 = sshll.u32 %s138_s1, 4  ;;  %s139_s5 = smov 128   ;;  %s79_s29 = int_to_ptr.vmem [resolvable:$true] %s78_s29 }
   0x7   :  { %99 = vmatpush.msra.mxu1 %v34_v4  ;;  %s140_s6 = smov 8  }
   0x8   :  { %60 = vmatpush.msra.mxu0 %v33_v5 }
   0x9   :  { %100 = vmatpush.msra.mxu1 %v33_v5 }
   0xa   :  { %61 = vmatpush.msra.mxu0 %v32_v6  ;;  %22 = vperm.xlu0 %109, %v17_v7  }
   0xb   :  { %101 = vmatpush.msra.mxu1 %v32_v6 }
   0xc   :  { %62 = vmatpush.msra.mxu0 %v31_v8 }
   0xd   :  { %102 = vmatpush.msra.mxu1 %v31_v8 }
   0xe   :  { %63 = vmatpush.msra.mxu0 %v30_v9 }
   0xf   :  { %103 = vmatpush.msra.mxu1 %v30_v9 }
  0x74   :  { %v20_v12 = vpop.permute.xlu0 %19 }
  0x75   :  { %vm24_vm2 = vcmp.eq.s32.totalorder %v15_v11, %v20_v12 }
  0x76   :  { %v92_v14 = vsel %vm24_vm2, 1.0, %v137_v13 }
  0x77   :  { %95 = vmatmul.msk.f32.vlgmr.msra.gmra.mxu0 %vm37_vm1, %v92_v14 }
  0x7c   :  { %v23_v15 = vpop.permute.xlu0 %22 }
  0x7d   :  { %vm25_vm3 = vcmp.eq.s32.totalorder %v15_v11, %v23_v15 }
  0x7e   :  { %v93_v16 = vsel %vm25_vm3, 1.0, %v137_v13 }
  0x7f   :  { %96 = vmatmul.msk.f32.vlgmr.msra.gmra.mxu1 %vm37_vm1, %v93_v16 }
  0xf4   :  { %v65_v17 = vpop.f32.mrf.mxu0 }
  0xf5   :  { %72 = vst.msk [vmem:[#allocation4] sm:$0xff] %vm71_vm4, %v65_v17 }
  0xfc   :  { %v68_v18 = vpop.f32.mrf.mxu1 }
  0xfd   :  { %73 = vst.msk [vmem:[#allocation4 + $0x8] sm:$0xff] %vm71_vm4, %v68_v18 }
  0xfe   :  { %86 = dma.vmem_to_hbm [thread:$0]  %s79_s29, 256, %s81_s4, [#allocation5], %s139_s5, %s139_s5, %s140_s6  }
  0xff   :  { %134 = dma.done.wait [#allocation5], 256  }
 0x100   :  { %135 = vsyncadd [#allocation5], 4294967040 }
 0x101   :  { %91 = vsyncpa [#allocation5], 1 }

</bundles_post_ra>
